<compile_context>
chip_gen: v7x
topology: tpu7x:2x2x1
jax: 0.10.0
libtpu: 0.0.40
codegen_flags: <defaults>
</compile_context>

<pallas_src>
import math

import jax
import jax.numpy as jnp
from jax import lax
from jax.experimental import pallas as pl
from jax.experimental.pallas import tpu as pltpu

# Small, module-consistent sizes.
B = 2             # batch
S = 8             # max number of atoms (seq len)
D = 32            # model_dim (hidden size)
H = 4             # head_count
DH = D // H       # dim_per_head
BS = B * S        # packed rows (all sequences in one tile)
NEG_INF = -1e18

OUT_W = 4 * D             # 128: lane-dense output slab width
ATTN_W = H * BS           # 64:  packed attention columns
PAD_W = OUT_W - D - ATTN_W  # 32: zero padding to reach 128 lanes


def _mha_kernel(x_ref, m_ref, p_ref, o_ref):
    """Single invocation; whole batch packed as (B*S, D) rows.

    m_ref encodes, per packed (query_row, key_row) pair:
      0 = attend, 1 = user-masked (same sequence), 2 = different sequence.
    """
    x = x_ref[...]                                    # (BS, D)   f32
    enc = m_ref[...]                                  # (BS, BS)  int32

    # Fused parameter slab: rows 0..D-1 weights, row D biases;
    # cols 0..3D-1 = QKV projection (scale pre-folded into Q), cols 3D..4D-1 = final linear.
    wqkv = p_ref[:D, :3 * D]                          # (D, 3D)
    bqkv = p_ref[D:D + 1, :3 * D]                     # (1, 3D)
    wo = p_ref[:D, 3 * D:4 * D]                       # (D, D)
    bo = p_ref[D:D + 1, 3 * D:4 * D]                  # (1, D)

    # One fused QKV matmul, columns grouped [Q_all | K_all | V_all].
    qkv = jnp.dot(x, wqkv, preferred_element_type=jnp.float32) + bqkv   # (BS, 3D)

    # Mask-derived tiles, computed once and reused by all heads.
    neg = jnp.where(enc != 0, NEG_INF, 0.0)           # additive score fill
    inseq = (enc < 2).astype(jnp.float32)             # same-sequence indicator
    keep = (enc == 0).astype(jnp.float32)             # post-softmax dropout fill

    attn_blocks = []
    ctx_blocks = []
    for h in range(H):                                # unrolled; no head-axis stack
        qh = qkv[:, h * DH:(h + 1) * DH]              # (BS, DH)  (1/sqrt(DH) folded)
        kh = qkv[:, D + h * DH:D + (h + 1) * DH]      # (BS, DH)
        vh = qkv[:, 2 * D + h * DH:2 * D + (h + 1) * DH]

        # scores = q_h @ k_h^T (transpose folded into the contraction).
        s = lax.dot_general(qh, kh, (((1,), (1,)), ((), ())),
                            preferred_element_type=jnp.float32) + neg   # (BS, BS)

        # Per-sequence softmax over keys.  Cross-sequence entries are -1e18 and
        # underflow to exactly 0; multiplying by `inseq` additionally makes
        # fully-masked query rows uniform over S (not BS) keys, matching the
        # module's softmax of an all -1e18 row exactly.
        s_max = jnp.max(s, axis=-1, keepdims=True)
        e = jnp.exp(s - s_max) * inseq
        denom = jnp.sum(e, axis=-1, keepdims=True)
        a = e * pl.reciprocal(denom, approx=False)    # exact: attns rows sum to 1
        attn_blocks.append(a)

        # Dropout = identity (eval), then post-softmax fill (needed for
        # fully-masked rows), then context for this head.
        ctx_blocks.append(jnp.dot(a * keep, vh, preferred_element_type=jnp.float32))

    # Lane-adjacent column groups: ctx lands directly in the (BS, D) layout the
    # final linear expects ("unshape" is free).
    ctx = jnp.concatenate(ctx_blocks, axis=-1)                        # (BS, D)
    out = jnp.dot(ctx, wo, preferred_element_type=jnp.float32) + bo   # (BS, D)

    attn_packed = jnp.concatenate(attn_blocks, axis=-1)               # (BS, H*BS)

    # Single lane-dense (BS, 128) store: [ output | packed attention | zeros ].
    pad = jnp.zeros((BS, PAD_W), jnp.float32)
    o_ref[...] = jnp.concatenate([out, attn_packed, pad], axis=-1)


def fuse_params(params):
    """One-time parameter prep: ONE (D+1, 4D) slab.

    Columns 0..3D-1 hold [Wq*scale | Wk | Wv] (so the in-kernel scale multiply
    disappears), columns 3D..4D-1 hold Wo; row D holds the matching biases.
    """
    wq, bq, wk, bk, wv, bv, wo, bo = params
    scale = 1.0 / math.sqrt(DH)
    w_top = jnp.concatenate([wq * scale, wk, wv, wo], axis=1)    # (D, 4D)
    b_bot = jnp.concatenate([bq * scale, bk, bv, bo], axis=1)    # (1, 4D)
    return jnp.concatenate([w_top, b_bot], axis=0)               # (D+1, 4D) = (33, 128)


def _packed_mask(mask):
    """(B,S,S) bool -> (B*S, B*S) int32 encoding:
    0 = attend, 1 = user-masked (diag blocks), 2 = cross-sequence."""
    same = jnp.eye(B, dtype=bool)[:, None, :, None]               # (B,1,B,1)
    user = mask[:, :, None, :].astype(jnp.int32)                  # (B,S,1,S)
    enc = jnp.where(same, user, 2)                                # (B,S,B,S)
    return enc.reshape(BS, BS).astype(jnp.int32)


@jax.jit
def poly_mha_forward(inputs, mask, fused_slab):
    """inputs: (B,S,D) f32; mask: (B,S,S) bool; fused_slab: (D+1, 4D) f32.
    Returns (output (B,S,D), attns (B,H,S,S)) like the PyTorch module."""
    x2 = inputs.reshape(BS, D)          # free leading-dim reshape in the wrapper
    m2 = _packed_mask(mask)

    slab = pl.pallas_call(
        _mha_kernel,
        out_shape=jax.ShapeDtypeStruct((BS, OUT_W), jnp.float32),
        in_specs=[
            pl.BlockSpec(memory_space=pltpu.MemorySpace.VMEM),
            pl.BlockSpec(memory_space=pltpu.MemorySpace.VMEM),
            pl.BlockSpec(memory_space=pltpu.MemorySpace.VMEM),
        ],
        out_specs=pl.BlockSpec(memory_space=pltpu.MemorySpace.VMEM),
    )(x2, m2, fused_slab)

    # Wrapper-side layout plumbing (off the kernel critical path).
    out = slab[:, :D].reshape(B, S, D)
    ap = slab[:, D:D + ATTN_W].reshape(B, S, H, B, S)     # [b, q, h, b2, k]
    attns = jnp.stack([ap[b, :, :, b, :] for b in range(B)], axis=0)  # (B,S,H,S)
    attns = attns.transpose(0, 2, 1, 3)                                # (B,H,S,S)
    return out, attns


def reference_forward(inputs, mask, params):
    """Pure-JAX reference mirroring the PyTorch module (with_pe=False, eval)."""
    wq, bq, wk, bk, wv, bv, wo, bo = params
    q = inputs @ wq + bq[0]
    k = inputs @ wk + bk[0]
    v = inputs @ wv + bv[0]

    def shape(x):  # (B, S, D) -> (B, H, S, DH)
        return x.reshape(B, S, H, DH).transpose(0, 2, 1, 3)

    qh, kh, vh = shape(q) / math.sqrt(DH), shape(k), shape(v)
    scores = jnp.einsum("bhqd,bhkd->bhqk", qh, kh)
    m = mask[:, None, :, :]
    scores = jnp.where(m, NEG_INF, scores)
    attn = jax.nn.softmax(scores, axis=-1)
    drop = jnp.where(m, 0.0, attn)
    ctx = jnp.einsum("bhqk,bhkd->bhqd", drop, vh)
    ctx = ctx.transpose(0, 2, 1, 3).reshape(B, S, D)
    out = ctx @ wo + bo[0]
    return out, attn


def make_params(key):
    ks = jax.random.split(key, 8)
    lim = 1.0 / math.sqrt(D)
    u = lambda k, shp: jax.random.uniform(k, shp, jnp.float32, -lim, lim)
    # Weights stored as [in, out] (already transposed vs. PyTorch's [out, in]).
    wq, wk, wv, wo = (u(ks[i], (D, D)) for i in range(4))
    bq, bk, bv, bo = (u(ks[4 + i], (1, D)) for i in range(4))
    return (wq, bq, wk, bk, wv, bv, wo, bo)


if __name__ == "__main__":
    key = jax.random.PRNGKey(0)
    k_x, k_p = jax.random.split(key)

    inputs = jax.random.normal(k_x, (B, S, D), dtype=jnp.float32)

    # Deterministic padding mask: batch 0 has 6 valid atoms, batch 1 has 8.
    # Padded positions are masked both as keys AND as queries, so batch 0 has
    # two fully-masked query rows (exercises the uniform-1/S degenerate path).
    valid_lens = jnp.array([6, 8], dtype=jnp.int32)
    pos = jnp.arange(S)
    pad = pos[None, :] >= valid_lens[:, None]                     # (B, S) True = pad
    mask = pad[:, None, :] | pad[:, :, None]                      # (B, S, S)

    params = make_params(k_p)
    fused = fuse_params(params)        # one-time param prep (outside the forward)

    out, attns = poly_mha_forward(inputs, mask, fused)
    out = jax.block_until_ready(out)
    attns = jax.block_until_ready(attns)

    ref_out, ref_attns = reference_forward(inputs, mask, params)

    assert out.shape == (B, S, D) and attns.shape == (B, H, S, S)
    # Everything is f32 with an exact softmax normalization; only matmul
    # accumulation order differs from the reference.
    assert jnp.allclose(out, ref_out, atol=1e-4, rtol=1e-4)
    assert jnp.allclose(attns, ref_attns, atol=1e-4, rtol=1e-4)

    print("KERNEL_OK")
</pallas_src>

<mosaic_0001>
module attributes {stable_mosaic.version = 11 : i64} {
  func.func @_mha_kernel(%arg0: memref<16x32xf32, #tpu.memory_space<vmem>>, %arg1: memref<16x16xi32, #tpu.memory_space<vmem>>, %arg2: memref<33x128xf32, #tpu.memory_space<vmem>>, %arg3: memref<16x128xf32, #tpu.memory_space<vmem>>) attributes {dimension_semantics = [], scalar_prefetch = 0 : i64, scratch_operands = 0 : i64, tpu.core_type = #tpu.core_type<tc>} {
    %c0 = arith.constant 0 : index
    %c0_0 = arith.constant 0 : index
    %0 = vector.load %arg0[%c0, %c0_0] : memref<16x32xf32, #tpu.memory_space<vmem>>, vector<16x32xf32>
    %c0_1 = arith.constant 0 : index
    %c0_2 = arith.constant 0 : index
    %1 = vector.load %arg1[%c0_1, %c0_2] : memref<16x16xi32, #tpu.memory_space<vmem>>, vector<16x16xi32>
    %c0_3 = arith.constant 0 : index
    %c0_4 = arith.constant 0 : index
    %2 = vector.load %arg2[%c0_3, %c0_4] : memref<33x128xf32, #tpu.memory_space<vmem>>, vector<32x96xf32>
    %c32 = arith.constant 32 : index
    %c0_5 = arith.constant 0 : index
    %3 = vector.load %arg2[%c32, %c0_5] : memref<33x128xf32, #tpu.memory_space<vmem>>, vector<1x96xf32>
    %c0_6 = arith.constant 0 : index
    %c96 = arith.constant 96 : index
    %4 = vector.load %arg2[%c0_6, %c96] : memref<33x128xf32, #tpu.memory_space<vmem>>, vector<32x32xf32>
    %c32_7 = arith.constant 32 : index
    %c96_8 = arith.constant 96 : index
    %5 = vector.load %arg2[%c32_7, %c96_8] : memref<33x128xf32, #tpu.memory_space<vmem>>, vector<1x32xf32>
    %cst = arith.constant dense<0.000000e+00> : vector<16x96xf32>
    %6 = tpu.matmul %0, %2, %cst {dimension_numbers = #tpu.dot_dimension_numbers<[1], [0], [0], [1], [0, 0, 1, 1], [], []>} : vector<16x32xf32>, vector<32x96xf32>, vector<16x96xf32> -> vector<16x96xf32>
    %7 = vector.broadcast %3 : vector<1x96xf32> to vector<16x96xf32>
    %8 = arith.addf %6, %7 : vector<16x96xf32>
    %c0_i32 = arith.constant 0 : i32
    %9 = vector.broadcast %c0_i32 : i32 to vector<16x16xi32>
    %10 = arith.cmpi ne, %1, %9 : vector<16x16xi32>
    %cst_9 = arith.constant -9.99999984E+17 : f32
    %cst_10 = arith.constant 0.000000e+00 : f32
    %11 = vector.broadcast %cst_9 : f32 to vector<16x16xf32>
    %12 = vector.broadcast %cst_10 : f32 to vector<16x16xf32>
    %13 = arith.select %10, %11, %12 : vector<16x16xi1>, vector<16x16xf32>
    %c2_i32 = arith.constant 2 : i32
    %14 = vector.broadcast %c2_i32 : i32 to vector<16x16xi32>
    %15 = arith.cmpi slt, %1, %14 : vector<16x16xi32>
    %16 = arith.extui %15 : vector<16x16xi1> to vector<16x16xi32>
    %17 = arith.sitofp %16 : vector<16x16xi32> to vector<16x16xf32>
    %c0_i32_11 = arith.constant 0 : i32
    %18 = vector.broadcast %c0_i32_11 : i32 to vector<16x16xi32>
    %19 = arith.cmpi eq, %1, %18 : vector<16x16xi32>
    %20 = arith.extui %19 : vector<16x16xi1> to vector<16x16xi32>
    %21 = arith.sitofp %20 : vector<16x16xi32> to vector<16x16xf32>
    %22 = vector.extract_strided_slice %8 {offsets = [0, 0], sizes = [16, 8], strides = [1, 1]} : vector<16x96xf32> to vector<16x8xf32>
    %23 = vector.extract_strided_slice %8 {offsets = [0, 32], sizes = [16, 8], strides = [1, 1]} : vector<16x96xf32> to vector<16x8xf32>
    %24 = vector.extract_strided_slice %8 {offsets = [0, 64], sizes = [16, 8], strides = [1, 1]} : vector<16x96xf32> to vector<16x8xf32>
    %cst_12 = arith.constant dense<0.000000e+00> : vector<16x16xf32>
    %25 = tpu.matmul %22, %23, %cst_12 {dimension_numbers = #tpu.dot_dimension_numbers<[1], [1], [0], [0], [0, 0, 1, 0], [], []>} : vector<16x8xf32>, vector<16x8xf32>, vector<16x16xf32> -> vector<16x16xf32>
    %26 = arith.addf %25, %13 : vector<16x16xf32>
    %cst_13 = arith.constant dense<0xFF800000> : vector<16xf32>
    %27 = vector.multi_reduction <maximumf>, %26, %cst_13 [1] : vector<16x16xf32> to vector<16xf32>
    %28 = vector.shape_cast %27 : vector<16xf32> to vector<16x1xf32>
    %29 = vector.broadcast %28 : vector<16x1xf32> to vector<16x16xf32>
    %30 = arith.subf %26, %29 : vector<16x16xf32>
    %31 = math.exp %30 : vector<16x16xf32>
    %32 = arith.mulf %31, %17 : vector<16x16xf32>
    %cst_14 = arith.constant dense<0.000000e+00> : vector<16xf32>
    %33 = vector.multi_reduction <add>, %32, %cst_14 [1] : vector<16x16xf32> to vector<16xf32>
    %34 = vector.shape_cast %33 : vector<16xf32> to vector<16x1xf32>
    %35 = tpu.reciprocal %34 : vector<16x1xf32> -> vector<16x1xf32>
    %36 = vector.broadcast %35 : vector<16x1xf32> to vector<16x16xf32>
    %37 = arith.mulf %32, %36 : vector<16x16xf32>
    %38 = arith.mulf %37, %21 : vector<16x16xf32>
    %cst_15 = arith.constant dense<0.000000e+00> : vector<16x8xf32>
    %39 = tpu.matmul %38, %24, %cst_15 {dimension_numbers = #tpu.dot_dimension_numbers<[1], [0], [0], [1], [0, 0, 1, 1], [], []>} : vector<16x16xf32>, vector<16x8xf32>, vector<16x8xf32> -> vector<16x8xf32>
    %40 = vector.extract_strided_slice %8 {offsets = [0, 8], sizes = [16, 8], strides = [1, 1]} : vector<16x96xf32> to vector<16x8xf32>
    %41 = vector.extract_strided_slice %8 {offsets = [0, 40], sizes = [16, 8], strides = [1, 1]} : vector<16x96xf32> to vector<16x8xf32>
    %42 = vector.extract_strided_slice %8 {offsets = [0, 72], sizes = [16, 8], strides = [1, 1]} : vector<16x96xf32> to vector<16x8xf32>
    %cst_16 = arith.constant dense<0.000000e+00> : vector<16x16xf32>
    %43 = tpu.matmul %40, %41, %cst_16 {dimension_numbers = #tpu.dot_dimension_numbers<[1], [1], [0], [0], [0, 0, 1, 0], [], []>} : vector<16x8xf32>, vector<16x8xf32>, vector<16x16xf32> -> vector<16x16xf32>
    %44 = arith.addf %43, %13 : vector<16x16xf32>
    %cst_17 = arith.constant dense<0xFF800000> : vector<16xf32>
    %45 = vector.multi_reduction <maximumf>, %44, %cst_17 [1] : vector<16x16xf32> to vector<16xf32>
    %46 = vector.shape_cast %45 : vector<16xf32> to vector<16x1xf32>
    %47 = vector.broadcast %46 : vector<16x1xf32> to vector<16x16xf32>
    %48 = arith.subf %44, %47 : vector<16x16xf32>
    %49 = math.exp %48 : vector<16x16xf32>
    %50 = arith.mulf %49, %17 : vector<16x16xf32>
    %cst_18 = arith.constant dense<0.000000e+00> : vector<16xf32>
    %51 = vector.multi_reduction <add>, %50, %cst_18 [1] : vector<16x16xf32> to vector<16xf32>
    %52 = vector.shape_cast %51 : vector<16xf32> to vector<16x1xf32>
    %53 = tpu.reciprocal %52 : vector<16x1xf32> -> vector<16x1xf32>
    %54 = vector.broadcast %53 : vector<16x1xf32> to vector<16x16xf32>
    %55 = arith.mulf %50, %54 : vector<16x16xf32>
    %56 = arith.mulf %55, %21 : vector<16x16xf32>
    %cst_19 = arith.constant dense<0.000000e+00> : vector<16x8xf32>
    %57 = tpu.matmul %56, %42, %cst_19 {dimension_numbers = #tpu.dot_dimension_numbers<[1], [0], [0], [1], [0, 0, 1, 1], [], []>} : vector<16x16xf32>, vector<16x8xf32>, vector<16x8xf32> -> vector<16x8xf32>
    %58 = vector.extract_strided_slice %8 {offsets = [0, 16], sizes = [16, 8], strides = [1, 1]} : vector<16x96xf32> to vector<16x8xf32>
    %59 = vector.extract_strided_slice %8 {offsets = [0, 48], sizes = [16, 8], strides = [1, 1]} : vector<16x96xf32> to vector<16x8xf32>
    %60 = vector.extract_strided_slice %8 {offsets = [0, 80], sizes = [16, 8], strides = [1, 1]} : vector<16x96xf32> to vector<16x8xf32>
    %cst_20 = arith.constant dense<0.000000e+00> : vector<16x16xf32>
    %61 = tpu.matmul %58, %59, %cst_20 {dimension_numbers = #tpu.dot_dimension_numbers<[1], [1], [0], [0], [0, 0, 1, 0], [], []>} : vector<16x8xf32>, vector<16x8xf32>, vector<16x16xf32> -> vector<16x16xf32>
    %62 = arith.addf %61, %13 : vector<16x16xf32>
    %cst_21 = arith.constant dense<0xFF800000> : vector<16xf32>
    %63 = vector.multi_reduction <maximumf>, %62, %cst_21 [1] : vector<16x16xf32> to vector<16xf32>
    %64 = vector.shape_cast %63 : vector<16xf32> to vector<16x1xf32>
    %65 = vector.broadcast %64 : vector<16x1xf32> to vector<16x16xf32>
    %66 = arith.subf %62, %65 : vector<16x16xf32>
    %67 = math.exp %66 : vector<16x16xf32>
    %68 = arith.mulf %67, %17 : vector<16x16xf32>
    %cst_22 = arith.constant dense<0.000000e+00> : vector<16xf32>
    %69 = vector.multi_reduction <add>, %68, %cst_22 [1] : vector<16x16xf32> to vector<16xf32>
    %70 = vector.shape_cast %69 : vector<16xf32> to vector<16x1xf32>
    %71 = tpu.reciprocal %70 : vector<16x1xf32> -> vector<16x1xf32>
    %72 = vector.broadcast %71 : vector<16x1xf32> to vector<16x16xf32>
    %73 = arith.mulf %68, %72 : vector<16x16xf32>
    %74 = arith.mulf %73, %21 : vector<16x16xf32>
    %cst_23 = arith.constant dense<0.000000e+00> : vector<16x8xf32>
    %75 = tpu.matmul %74, %60, %cst_23 {dimension_numbers = #tpu.dot_dimension_numbers<[1], [0], [0], [1], [0, 0, 1, 1], [], []>} : vector<16x16xf32>, vector<16x8xf32>, vector<16x8xf32> -> vector<16x8xf32>
    %76 = vector.extract_strided_slice %8 {offsets = [0, 24], sizes = [16, 8], strides = [1, 1]} : vector<16x96xf32> to vector<16x8xf32>
    %77 = vector.extract_strided_slice %8 {offsets = [0, 56], sizes = [16, 8], strides = [1, 1]} : vector<16x96xf32> to vector<16x8xf32>
    %78 = vector.extract_strided_slice %8 {offsets = [0, 88], sizes = [16, 8], strides = [1, 1]} : vector<16x96xf32> to vector<16x8xf32>
    %cst_24 = arith.constant dense<0.000000e+00> : vector<16x16xf32>
    %79 = tpu.matmul %76, %77, %cst_24 {dimension_numbers = #tpu.dot_dimension_numbers<[1], [1], [0], [0], [0, 0, 1, 0], [], []>} : vector<16x8xf32>, vector<16x8xf32>, vector<16x16xf32> -> vector<16x16xf32>
    %80 = arith.addf %79, %13 : vector<16x16xf32>
    %cst_25 = arith.constant dense<0xFF800000> : vector<16xf32>
    %81 = vector.multi_reduction <maximumf>, %80, %cst_25 [1] : vector<16x16xf32> to vector<16xf32>
    %82 = vector.shape_cast %81 : vector<16xf32> to vector<16x1xf32>
    %83 = vector.broadcast %82 : vector<16x1xf32> to vector<16x16xf32>
    %84 = arith.subf %80, %83 : vector<16x16xf32>
    %85 = math.exp %84 : vector<16x16xf32>
    %86 = arith.mulf %85, %17 : vector<16x16xf32>
    %cst_26 = arith.constant dense<0.000000e+00> : vector<16xf32>
    %87 = vector.multi_reduction <add>, %86, %cst_26 [1] : vector<16x16xf32> to vector<16xf32>
    %88 = vector.shape_cast %87 : vector<16xf32> to vector<16x1xf32>
    %89 = tpu.reciprocal %88 : vector<16x1xf32> -> vector<16x1xf32>
    %90 = vector.broadcast %89 : vector<16x1xf32> to vector<16x16xf32>
    %91 = arith.mulf %86, %90 : vector<16x16xf32>
    %92 = arith.mulf %91, %21 : vector<16x16xf32>
    %cst_27 = arith.constant dense<0.000000e+00> : vector<16x8xf32>
    %93 = tpu.matmul %92, %78, %cst_27 {dimension_numbers = #tpu.dot_dimension_numbers<[1], [0], [0], [1], [0, 0, 1, 1], [], []>} : vector<16x16xf32>, vector<16x8xf32>, vector<16x8xf32> -> vector<16x8xf32>
    %94 = tpu.concatenate %39, %57, %75, %93 in 1 : vector<16x8xf32>, vector<16x8xf32>, vector<16x8xf32>, vector<16x8xf32> -> vector<16x32xf32>
    %cst_28 = arith.constant dense<0.000000e+00> : vector<16x32xf32>
    %95 = tpu.matmul %94, %4, %cst_28 {dimension_numbers = #tpu.dot_dimension_numbers<[1], [0], [0], [1], [0, 0, 1, 1], [], []>} : vector<16x32xf32>, vector<32x32xf32>, vector<16x32xf32> -> vector<16x32xf32>
    %96 = vector.broadcast %5 : vector<1x32xf32> to vector<16x32xf32>
    %97 = arith.addf %95, %96 : vector<16x32xf32>
    %98 = tpu.concatenate %37, %55, %73, %91 in 1 : vector<16x16xf32>, vector<16x16xf32>, vector<16x16xf32>, vector<16x16xf32> -> vector<16x64xf32>
    %cst_29 = arith.constant 0.000000e+00 : f32
    %99 = vector.broadcast %cst_29 : f32 to vector<16x32xf32>
    %100 = tpu.concatenate %97, %98, %99 in 1 : vector<16x32xf32>, vector<16x64xf32>, vector<16x32xf32> -> vector<16x128xf32>
    %c0_30 = arith.constant 0 : index
    %c0_31 = arith.constant 0 : index
    %101 = vector.load %arg3[%c0_30, %c0_31] : memref<16x128xf32, #tpu.memory_space<vmem>>, vector<16x128xf32>
    tpu.vector_store %arg3[%c0_30, %c0_31], %100 {strides = array<i32>} : memref<16x128xf32, #tpu.memory_space<vmem>>, vector<16x128xf32>,
    return
  }
}

</mosaic_0001>

<bundles_post_ra>
// kernel: poly_mha_forward.1
= control target key start
LH: loop header
LB: loop body
LE: loop exit
PB: predicated region body
PF: predicated region fallthrough
CT: control target
= control target key end

     0   :  { %vm27_vm0 = vcmask 261120   ;;  %vm131_vm1 = vcmask 64512   ;;  %v1433_v22 = vmov 0.0   ;;  %vm215_vm5 = vcmask 130048   ;;  %s1435_s29 = smov 88   ;;  %s1436_s30 = smov 120   ;;  %s1710_s2 = inlined_call_operand.vmem [shape: f32[33,128], index: 2, kind: input, shape index: {}]   ;;  %s1711_s0 = inlined_call_operand.vmem [shape: f32[16,32], index: 0, kind: input, shape index: {}]   ;;  %s1712_s1 = inlined_call_operand.vmem [shape: s32[16,16], index: 1, kind: input, shape index: {}]   ;;  %s1713_s3 = inlined_call_operand.vmem [shape: f32[16,128], index: 3, kind: output, shape index: {}]  }
   0x1   :  { %v1471_v0 = vld [vmem:[%s1710_s2] sm:$0xff]  ;;  %v1476_v1 = vld [vmem:[%s1710_s2 + $0x8] sm:$0xff]  ;;  %v1481_v2 = vld [vmem:[%s1710_s2 + $0x10] sm:$0xff]  ;;  %s1437_s4 = smov 56   ;;  %s1438_s5 = smov 80   ;;  %vm969_vm10 = vcmask 195584  }
   0x2   :  { %v1390_v3 = vpack.i.bf16 %v1476_v1, %v1471_v0  ;;  %v1278_v4 = vpack.c.bf16 %v1476_v1, %v1471_v0  ;;  %v1490_v5 = vld [vmem:[%s1710_s2 + $0x18] sm:$0xff]  ;;  %v14_v6 = vld [vmem:[%s1711_s0] sm:$0xff]  ;;  %v15_v8 = vld [vmem:[%s1711_s0 + $0x8] sm:$0xff]  ;;  %s1432_s0 = smov 96   ;;  %s1439_s6 = smov 112   ;;  %vm1101_vm11 = vcmask 392192  }
   0x3   :  { %v1282_v7 = vpack.c.bf16 %v1490_v5, %v1481_v2  ;;  %1208 = vmatprep.mubr.msk.f32.mxu0 %vm27_vm0, %v14_v6  ;;  %v1505_v9 = vld [vmem:[%s1710_s2 + $0x20] ss:$0 sm:$0xff]  ;;  %vm1522_vm2 = vmpackc.low %vm131_vm1, %vm131_vm1  ;;  %v1535_v20 = vld [vmem:[%s1712_s1 + $0x8] sm:$0xff]  ;;  %s1440_s7 = smov 72   ;;  %s1441_s8 = smov 104   ;;  %vm1114_vm12 = vcmask 785408  }
   0x4   :  { %1279 = vmatprep.subr.bf16.mxu0 %v1278_v4  ;;  %v16_v21 = vld [vmem:[%s1712_s1] sm:$0xff]  ;;  %vm110_vm3 = vcmp.ne.s32.totalorder %v1535_v20, 0  ;;  %s1434_s1 = smov 64   ;;  %vm114_vm6 = vcmp.lt.s32.totalorder %v1535_v20, 2  ;;  %vm120_vm9 = vcmp.eq.s32.totalorder %v1535_v20, 0  ;;  %s1442_s9 = smov 48  }
   0x5   :  { %1281 = vmatpush3.bf16.msra.mxu0 %v1278_v4  ;;  %vm109_vm4 = vcmp.ne.s32.totalorder %v16_v21, 0  ;;  %v1541_v23 = vsel %vm110_vm3, -1e+18, %v1433_v22  ;;  %vm113_vm7 = vcmp.lt.s32.totalorder %v16_v21, 2  ;;  %v1556_v45 = vsel %vm114_vm6, 1.0, %v1433_v22  ;;  %s1443_s10 = smov 32  }
   0x6   :  { %1283 = vmatprep.subr.bf16.mxu0 %v1282_v7  ;;  %v1543_v24 = vsel %vm109_vm4, -1e+18, %v1433_v22  ;;  %v1558_v47 = vsel %vm113_vm7, 1.0, %v1433_v22  ;;  %vm119_vm8 = vcmp.eq.s32.totalorder %v16_v21, 0  ;;  %v1571_v59 = vsel %vm120_vm9, 1.0, %v1433_v22  ;;  %s1444_s11 = smov 40  }
   0x7   :  { %v1567_v57 = vsel %vm119_vm8, 1.0, %v1433_v22  ;;  %s1445_s12 = smov 8   ;;  %s1446_s13 = smov 16  }
   0x8   :  { %s1447_s14 = smov 24  }
   0x9   :  { %1285 = vmatpush3.bf16.msra.mxu0 %v1282_v7 }
   0xc   :  { %1209 = vmatmul.mubr.msk.f32.vlgmr.msra.gmra.mrb[0].mxu0 %vm27_vm0, %v15_v8 }
  0xdf   :  { %v1210_v10 = vpop.f32.mrb[0].mxu0 }
  0xe0   :  { %v1508_v11 = vadd.f32 %v1210_v10, %v1505_v9  ;;  %v100_v12 = vpop.f32.mrb[1].mxu0 }
  0xe1   :  { %v1511_v13 = vadd.f32 %v1505_v9, %v100_v12 }
  0xe3   :  { %1215 = vmatprep.mubr.msk.f32.mxu1 %vm131_vm1, %v1511_v13  ;;  %v1517_v14 = vpack.i.bf16 %v1508_v11, %v1511_v13 }
  0xe5   :  { %1351 = vrot.lane.b32.xlu0 %v1517_v14, %s1432_s0 }
 0x157   :  { %v1352_v15 = vpop.permute.xlu0 %1351 }
 0x158   :  { %v1354_v16 = vunpack.i.h.bf16 %v1352_v15  ;;  %v1353_v17 = vunpack.i.l.bf16 %v1352_v15 }
 0x15a   :  { %v1286_v19 = vpack.c.bf16 %v1354_v16, %v1353_v17 }
 0x15c   :  { %1288 = vmatprep.subr.msk.bf16.mxu1 %vm1522_vm2, %v1286_v19 }
 0x15d   :  { %1291 = vmatpush3.bf16.xpose.msk.msra.mxu1 %vm1522_vm2, %v1286_v19 }
 0x164   :  { %1216 = vmatmul.mubr.msk.f32.vlgmr.msra.gmra.mrb[0].mxu1 %vm131_vm1, %v1508_v11 }
 0x237   :  { %v1217_v25 = vpop.f32.mrb[0].mxu1 }
 0x238   :  { %v212_v26 = vadd.f32 %v1217_v25, %v1541_v23  ;;  %v206_v27 = vpop.f32.mrb[1].mxu1 }
 0x239   :  { %v207_v28 = vadd.f32 %v206_v27, %v1543_v24 }
 0x23a   :  { %v219_v29 = vsel %vm215_vm5, %v212_v26, -inf }
 0x23b   :  { %220 = vmax.xlane.f32.xlu1 %v219_v29  ;;  %v216_v30 = vsel %vm215_vm5, %v207_v28, -inf }
 0x23c   :  { %217 = vmax.xlane.f32.xlu0 %v216_v30 }
 0x24c   :  { %1356 = vrot.lane.b32.xlu1 %v1517_v14, %s1434_s1 }
 0x250   :  { %1361 = vrot.lane.b32.xlu1 %v1517_v14, %s1435_s29 }
 0x252   :  { %331 = vrot.lane.b32.xlu0 %v1508_v11, %s1436_s30 }
 0x2c8   :  { %v221_v31 = vpop.xlane.xlu1 %220 }
 0x2c9   :  { %v223_v32 = vsub.f32 %v212_v26, %v221_v31  ;;  %v218_v33 = vpop.xlane.xlu0 %217 }
 0x2ca   :  { %v222_v34 = vsub.f32 %v207_v28, %v218_v33 }
 0x2cb   :  { %v226_v35 = vmul.f32 1.442695, %v223_v32 }
 0x2cc   :  { %v224_v36 = vmul.f32 1.442695, %v222_v34  ;;  %v1357_v37 = vpop.permute.xlu1 %1356 }
 0x2cd   :  { %1400 = vpow2.f32 %v226_v35  ;;  %v1359_v38 = vunpack.i.h.bf16 %v1357_v37  ;;  %v1358_v39 = vunpack.i.l.bf16 %v1357_v37  ;;  %v332_v4 = vpop.permute.xlu0 %331 }
 0x2ce   :  { %1402 = vpow2.f32 %v224_v36 }
 0x2cf   :  { %v1292_v40 = vpack.c.bf16 %v1359_v38, %v1358_v39 }
 0x2d0   :  { %v1362_v41 = vpop.permute.xlu1 %1361 }
 0x2d1   :  { %v1364_v42 = vunpack.i.h.bf16 %v1362_v41  ;;  %v1363_v43 = vunpack.i.l.bf16 %v1362_v41  ;;  %1293 = vmatprep.subr.bf16.mxu1 %v1292_v40 }
 0x2d2   :  { %1295 = vmatpush3.bf16.msra.mxu1 %v1292_v40 }
 0x2d3   :  { %v1296_v44 = vpack.c.bf16 %v1364_v42, %v1363_v43 }
 0x2d5   :  { %1298 = vmatprep.subr.msk.bf16.mxu1 %vm1522_vm2, %v1296_v44 }
 0x2d7   :  { %v1401_v46 = vpop.eup %1400 }
 0x2d8   :  { %v1403_v48 = vpop.eup %1402  ;;  %v229_v49 = vmul.f32 %v1401_v46, %v1556_v45 }
 0x2d9   :  { %v228_v51 = vmul.f32 %v1403_v48, %v1558_v47 }
 0x2da   :  { %v233_v50 = vsel %vm215_vm5, %v229_v49, 0.0 }
 0x2db   :  { %234 = vadd.xlane.f32.xlu1 %v233_v50  ;;  %v230_v52 = vsel %vm215_vm5, %v228_v51, 0.0 }
 0x2df   :  { %231 = vadd.xlane.f32.xlu1 %v230_v52 }
 0x2f0   :  { %329 = vrot.lane.b32.xlu1 %v1511_v13, %s1436_s30 }
 0x368   :  { %v235_v53 = vpop.xlane.xlu1 %234 }
 0x369   :  { %1404 = vrcp.f32 %v235_v53 }
 0x36c   :  { %v232_v54 = vpop.xlane.xlu1 %231 }
 0x36d   :  { %1406 = vrcp.f32 %v232_v54 }
 0x370   :  { %v330_v63 = vpop.permute.xlu1 %329 }
 0x373   :  { %v1405_v55 = vpop.eup %1404 }
 0x374   :  { %v1569_v58 = vmul.f32 %v1405_v55, %v229_v49 }
 0x376   :  { %v241_v62 = vmul.f32 %v1571_v59, %v1569_v58 }
 0x377   :  { %v1407_v56 = vpop.eup %1406 }
 0x378   :  { %v1573_v60 = vmul.f32 %v1407_v56, %v228_v51 }
 0x37a   :  { %v240_v61 = vmul.f32 %v1567_v57, %v1573_v60 }
 0x37c   :  { %1222 = vmatprep.mubr.msk.f32.mxu1 %vm215_vm5, %v240_v61 }
 0x37d   :  { %1223 = vmatmul.mubr.msk.f32.vlgmr.msra.gmra.mrb[2].mxu1 %vm215_vm5, %v241_v62 }
 0x37e   :  { %1301 = vmatpush3.bf16.xpose.msk.msra.mxu1 %vm1522_vm2, %v1296_v44  ;;  %1229 = vmatprep.mubr.msk.f32.mxu1 %vm131_vm1, %v330_v63 }
 0x385   :  { %1230 = vmatmul.mubr.msk.f32.vlgmr.msra.gmra.mrb[4].mxu1 %vm131_vm1, %v332_v4 }
 0x450   :  { %v1585_v6 = vpop.f32.mrb[2].mxu1 }
 0x451   :  { %v1587_v7 = vpop.f32.mrb[3].mxu1 }
 0x458   :  { %v1231_v8 = vpop.f32.mrb[4].mxu1 }
 0x459   :  { %v417_v10 = vadd.f32 %v1231_v8, %v1541_v23  ;;  %v411_v12 = vpop.f32.mrb[5].mxu1 }
 0x45a   :  { %v412_v15 = vadd.f32 %v411_v12, %v1543_v24 }
 0x45b   :  { %v423_v16 = vsel %vm215_vm5, %v417_v10, -inf }
 0x45c   :  { %424 = vmax.xlane.f32.xlu0 %v423_v16  ;;  %v420_v17 = vsel %vm215_vm5, %v412_v15, -inf }
 0x45d   :  { %421 = vmax.xlane.f32.xlu1 %v420_v17 }
 0x46e   :  { %1366 = vrot.lane.b32.xlu1 %v1517_v14, %s1437_s4 }
 0x472   :  { %1371 = vrot.lane.b32.xlu0 %v1517_v14, %s1438_s5 }
 0x4e9   :  { %v425_v19 = vpop.xlane.xlu0 %424 }
 0x4ea   :  { %v427_v20 = vsub.f32 %v417_v10, %v425_v19  ;;  %v422_v21 = vpop.xlane.xlu1 %421 }
 0x4eb   :  { %v426_v22 = vsub.f32 %v412_v15, %v422_v21 }
 0x4ec   :  { %v430_v25 = vmul.f32 1.442695, %v427_v20 }
 0x4ed   :  { %v428_v26 = vmul.f32 1.442695, %v426_v22  ;;  %v1372_v27 = vpop.permute.xlu0 %1371 }
 0x4ee   :  { %1408 = vpow2.f32 %v430_v25  ;;  %v1374_v28 = vunpack.i.h.bf16 %v1372_v27  ;;  %v1367_v29 = vpop.permute.xlu1 %1366  ;;  %v1373_v30 = vunpack.i.l.bf16 %v1372_v27 }
 0x4ef   :  { %1410 = vpow2.f32 %v428_v26  ;;  %v1369_v31 = vunpack.i.h.bf16 %v1367_v29  ;;  %v1368_v32 = vunpack.i.l.bf16 %v1367_v29 }
 0x4f0   :  { %v1306_v34 = vpack.c.bf16 %v1374_v28, %v1373_v30 }
 0x4f1   :  { %v1302_v33 = vpack.c.bf16 %v1369_v31, %v1368_v32 }
 0x4f3   :  { %1303 = vmatprep.subr.bf16.mxu0 %v1302_v33 }
 0x4f4   :  { %1305 = vmatpush3.bf16.msra.mxu0 %v1302_v33 }
 0x4f5   :  { %1308 = vmatprep.subr.msk.bf16.mxu0 %vm1522_vm2, %v1306_v34 }
 0x4f8   :  { %v1409_v35 = vpop.eup %1408 }
 0x4f9   :  { %v1411_v36 = vpop.eup %1410  ;;  %v433_v37 = vmul.f32 %v1409_v35, %v1556_v45 }
 0x4fa   :  { %v432_v39 = vmul.f32 %v1411_v36, %v1558_v47 }
 0x4fb   :  { %v437_v38 = vsel %vm215_vm5, %v433_v37, 0.0 }
 0x4fc   :  { %438 = vadd.xlane.f32.xlu1 %v437_v38  ;;  %v434_v40 = vsel %vm215_vm5, %v432_v39, 0.0 }
 0x500   :  { %435 = vadd.xlane.f32.xlu1 %v434_v40 }
 0x511   :  { %533 = vrot.lane.b32.xlu1 %v1511_v13, %s1439_s6 }
 0x515   :  { %535 = vrot.lane.b32.xlu1 %v1508_v11, %s1439_s6 }
 0x589   :  { %v439_v41 = vpop.xlane.xlu1 %438 }
 0x58a   :  { %1412 = vrcp.f32 %v439_v41 }
 0x58d   :  { %v436_v42 = vpop.xlane.xlu1 %435 }
 0x58e   :  { %1414 = vrcp.f32 %v436_v42 }
 0x591   :  { %v534_v51 = vpop.permute.xlu1 %533 }
 0x594   :  { %v1413_v43 = vpop.eup %1412 }
 0x595   :  { %v1603_v46 = vmul.f32 %v1413_v43, %v433_v37  ;;  %v536_v52 = vpop.permute.xlu1 %535 }
 0x597   :  { %v445_v50 = vmul.f32 %v1571_v59, %v1603_v46 }
 0x598   :  { %v1415_v44 = vpop.eup %1414 }
 0x599   :  { %v1605_v48 = vmul.f32 %v1415_v44, %v432_v39 }
 0x59b   :  { %v444_v49 = vmul.f32 %v1567_v57, %v1605_v48 }
 0x59d   :  { %1236 = vmatprep.mubr.msk.f32.mxu0 %vm215_vm5, %v444_v49 }
 0x59e   :  { %1237 = vmatmul.mubr.msk.f32.vlgmr.msra.gmra.mrb[2].mxu0 %vm215_vm5, %v445_v50 }
 0x59f   :  { %1311 = vmatpush3.bf16.xpose.msk.msra.mxu0 %vm1522_vm2, %v1306_v34  ;;  %1243 = vmatprep.mubr.msk.f32.mxu0 %vm131_vm1, %v534_v51 }
 0x5a6   :  { %1244 = vmatmul.mubr.msk.f32.vlgmr.msra.gmra.mrb[4].mxu0 %vm131_vm1, %v536_v52 }
 0x671   :  { %v1617_v53 = vpop.f32.mrb[2].mxu0 }
 0x672   :  { %v1619_v54 = vpop.f32.mrb[3].mxu0 }
 0x679   :  { %v1245_v55 = vpop.f32.mrb[4].mxu0 }
 0x67a   :  { %v621_v56 = vadd.f32 %v1245_v55, %v1541_v23  ;;  %v615_v61 = vpop.f32.mrb[5].mxu0 }
 0x67b   :  { %v616_v62 = vadd.f32 %v615_v61, %v1543_v24 }
 0x67c   :  { %v627_v63 = vsel %vm215_vm5, %v621_v56, -inf }
 0x67d   :  { %628 = vmax.xlane.f32.xlu0 %v627_v63  ;;  %v624_v4 = vsel %vm215_vm5, %v616_v62, -inf }
 0x67e   :  { %625 = vmax.xlane.f32.xlu1 %v624_v4 }
 0x70a   :  { %v629_v8 = vpop.xlane.xlu0 %628 }
 0x70b   :  { %v631_v10 = vsub.f32 %v621_v56, %v629_v8  ;;  %v626_v12 = vpop.xlane.xlu1 %625 }
 0x70c   :  { %v630_v15 = vsub.f32 %v616_v62, %v626_v12 }
 0x70d   :  { %v634_v16 = vmul.f32 1.442695, %v631_v10 }
 0x70e   :  { %v632_v17 = vmul.f32 1.442695, %v630_v15 }
 0x70f   :  { %1416 = vpow2.f32 %v634_v16 }
 0x710   :  { %1418 = vpow2.f32 %v632_v17  ;;  %v1395_v17 = vpack.i.bf16 %v1490_v5, %v1481_v2 }
 0x719   :  { %v1417_v19 = vpop.eup %1416 }
 0x71a   :  { %v1419_v20 = vpop.eup %1418  ;;  %v637_v21 = vmul.f32 %v1417_v19, %v1556_v45 }
 0x71b   :  { %v636_v22 = vmul.f32 %v1419_v20, %v1558_v47 }
 0x71c   :  { %v641_v25 = vsel %vm215_vm5, %v637_v21, 0.0 }
 0x71d   :  { %642 = vadd.xlane.f32.xlu1 %v641_v25  ;;  %v638_v26 = vsel %vm215_vm5, %v636_v22, 0.0 }
 0x71e   :  { %639 = vadd.xlane.f32.xlu0 %v638_v26 }
 0x72e   :  { %1381 = vrot.lane.b32.xlu1 %v1517_v14, %s1440_s7 }
 0x732   :  { %737 = vrot.lane.b32.xlu1 %v1511_v13, %s1441_s8 }
 0x734   :  { %1376 = vrot.lane.b32.xlu0 %v1517_v14, %s1442_s9 }
 0x738   :  { %739 = vrot.lane.b32.xlu0 %v1508_v11, %s1441_s8 }
 0x7aa   :  { %v643_v27 = vpop.xlane.xlu1 %642 }
 0x7ab   :  { %1420 = vrcp.f32 %v643_v27  ;;  %v640_v28 = vpop.xlane.xlu0 %639 }
 0x7ac   :  { %1422 = vrcp.f32 %v640_v28 }
 0x7ae   :  { %v1382_v29 = vpop.permute.xlu1 %1381 }
 0x7af   :  { %v1377_v30 = vpop.permute.xlu0 %1376  ;;  %v1384_v31 = vunpack.i.h.bf16 %v1382_v29  ;;  %v1383_v32 = vunpack.i.l.bf16 %v1382_v29 }
 0x7b0   :  { %v1379_v33 = vunpack.i.h.bf16 %v1377_v30  ;;  %v1378_v34 = vunpack.i.l.bf16 %v1377_v30 }
 0x7b1   :  { %v1316_v36 = vpack.c.bf16 %v1384_v31, %v1383_v32 }
 0x7b2   :  { %v1312_v35 = vpack.c.bf16 %v1379_v33, %v1378_v34  ;;  %v738_v41 = vpop.permute.xlu1 %737 }
 0x7b3   :  { %v740_v42 = vpop.permute.xlu0 %739 }
 0x7b4   :  { %1313 = vmatprep.subr.bf16.mxu1 %v1312_v35 }
 0x7b5   :  { %v1421_v13 = vpop.eup %1420  ;;  %1315 = vmatpush3.bf16.msra.mxu1 %v1312_v35 }
 0x7b6   :  { %v1423_v37 = vpop.eup %1422  ;;  %v1634_v38 = vmul.f32 %v1421_v13, %v637_v21  ;;  %1318 = vmatprep.subr.msk.bf16.mxu1 %vm1522_vm2, %v1316_v36 }
 0x7b7   :  { %v1638_v11 = vmul.f32 %v1423_v37, %v636_v22 }
 0x7b8   :  { %v649_v40 = vmul.f32 %v1571_v59, %v1634_v38 }
 0x7b9   :  { %v648_v39 = vmul.f32 %v1567_v57, %v1638_v11 }
 0x7bb   :  { %1250 = vmatprep.mubr.msk.f32.mxu1 %vm215_vm5, %v648_v39 }
 0x7bc   :  { %1251 = vmatmul.mubr.msk.f32.vlgmr.msra.gmra.mrb[6].mxu1 %vm215_vm5, %v649_v40 }
 0x7bd   :  { %1257 = vmatprep.mubr.msk.f32.mxu1 %vm131_vm1, %v738_v41 }
 0x7be   :  { %1321 = vmatpush3.bf16.xpose.msk.msra.mxu1 %vm1522_vm2, %v1316_v36 }
 0x7c5   :  { %1258 = vmatmul.mubr.msk.f32.vlgmr.msra.gmra.mrb[8].mxu1 %vm131_vm1, %v740_v42 }
 0x88f   :  { %v1252_v43 = vpop.f32.mrb[6].mxu1 }
 0x890   :  { %v728_v44 = vpop.f32.mrb[7].mxu1 }
 0x898   :  { %v1259_v49 = vpop.f32.mrb[8].mxu1 }
 0x899   :  { %v825_v50 = vadd.f32 %v1259_v49, %v1541_v23  ;;  %v819_v51 = vpop.f32.mrb[9].mxu1 }
 0x89a   :  { %v820_v52 = vadd.f32 %v819_v51, %v1543_v24 }
 0x89b   :  { %v831_v55 = vsel %vm215_vm5, %v825_v50, -inf }
 0x89c   :  { %832 = vmax.xlane.f32.xlu0 %v831_v55  ;;  %v828_v56 = vsel %vm215_vm5, %v820_v52, -inf }
 0x89d   :  { %829 = vmax.xlane.f32.xlu1 %v828_v56 }
 0x929   :  { %v833_v61 = vpop.xlane.xlu0 %832 }
 0x92a   :  { %v835_v18 = vsub.f32 %v825_v50, %v833_v61  ;;  %v830_v62 = vpop.xlane.xlu1 %829 }
 0x92b   :  { %v834_v63 = vsub.f32 %v820_v52, %v830_v62 }
 0x92c   :  { %v838_v4 = vmul.f32 1.442695, %v835_v18 }
 0x92d   :  { %v836_v8 = vmul.f32 1.442695, %v834_v63 }
 0x92e   :  { %1424 = vpow2.f32 %v838_v4 }
 0x92f   :  { %1426 = vpow2.f32 %v836_v8 }
 0x938   :  { %v1425_v10 = vpop.eup %1424 }
 0x939   :  { %v1427_v12 = vpop.eup %1426  ;;  %v841_v23 = vmul.f32 %v1425_v10, %v1556_v45 }
 0x93a   :  { %v840_v24 = vmul.f32 %v1427_v12, %v1558_v47 }
 0x93b   :  { %v845_v15 = vsel %vm215_vm5, %v841_v23, 0.0 }
 0x93c   :  { %846 = vadd.xlane.f32.xlu1 %v845_v15  ;;  %v842_v16 = vsel %vm215_vm5, %v840_v24, 0.0 }
 0x93d   :  { %843 = vadd.xlane.f32.xlu0 %v842_v16 }
 0x94d   :  { %1391 = vrot.lane.b32.xlu1 %v1390_v3, %s1443_s10 }
 0x951   :  { %1396 = vrot.lane.b32.xlu1 %v1395_v17, %s1443_s10 }
 0x953   :  { %1386 = vrot.lane.b32.xlu0 %v1517_v14, %s1444_s11 }
 0x955   :  { %945 = vrot.lane.b32.xlu1 %v1617_v53, %s1445_s12 }
 0x957   :  { %943 = vrot.lane.b32.xlu0 %v1619_v54, %s1445_s12 }
 0x959   :  { %953 = vrot.lane.b32.xlu1 %v1252_v43, %s1446_s13 }
 0x95b   :  { %951 = vrot.lane.b32.xlu0 %v728_v44, %s1446_s13 }
 0x9c9   :  { %v847_v0 = vpop.xlane.xlu1 %846 }
 0x9ca   :  { %1428 = vrcp.f32 %v847_v0  ;;  %v844_v1 = vpop.xlane.xlu0 %843 }
 0x9cb   :  { %1430 = vrcp.f32 %v844_v1 }
 0x9cd   :  { %v1392_v2 = vpop.permute.xlu1 %1391 }
 0x9ce   :  { %v1394_v3 = vunpack.i.h.bf16 %v1392_v2  ;;  %v1393_v5 = vunpack.i.l.bf16 %v1392_v2  ;;  %v1387_v45 = vpop.permute.xlu0 %1386 }
 0x9cf   :  { %v1389_v47 = vunpack.i.h.bf16 %v1387_v45  ;;  %v1388_v14 = vunpack.i.l.bf16 %v1387_v45 }
 0x9d0   :  { %v1326_v19 = vpack.c.bf16 %v1394_v3, %v1393_v5 }
 0x9d1   :  { %v1322_v20 = vpack.c.bf16 %v1389_v47, %v1388_v14  ;;  %v1397_v54 = vpop.permute.xlu1 %1396 }
 0x9d2   :  { %v1399_v25 = vunpack.i.h.bf16 %v1397_v54  ;;  %v1398_v26 = vunpack.i.l.bf16 %v1397_v54 }
 0x9d3   :  { %1323 = vmatprep.subr.bf16.mxu0 %v1322_v20 }
 0x9d4   :  { %v1429_v53 = vpop.eup %1428  ;;  %1325 = vmatpush3.bf16.msra.mxu0 %v1322_v20  ;;  %v1330_v29 = vpack.c.bf16 %v1399_v25, %v1398_v26 }
 0x9d5   :  { %v1431_v21 = vpop.eup %1430  ;;  %v851_v22 = vmul.f32 %v1429_v53, %v841_v23  ;;  %1327 = vmatprep.subr.bf16.mxu0 %v1326_v19 }
 0x9d6   :  { %v850_v27 = vmul.f32 %v1431_v21, %v840_v24 }
 0x9d7   :  { %v853_v30 = vmul.f32 %v1571_v59, %v851_v22  ;;  %v944_v59 = vpop.permute.xlu0 %943 }
 0x9d8   :  { %v852_v28 = vmul.f32 %v1567_v57, %v850_v27  ;;  %v946_v57 = vpop.permute.xlu1 %945 }
 0x9d9   :  { %v966_v35 = vsel %vm131_vm1, %v1585_v6, %v946_v57 }
 0x9da   :  { %1264 = vmatprep.mubr.msk.f32.mxu0 %vm215_vm5, %v852_v28 }
 0x9db   :  { %1265 = vmatmul.mubr.msk.f32.vlgmr.msra.gmra.mrb[6].mxu0 %vm215_vm5, %v853_v30 }
 0x9dc   :  { %1329 = vmatpush3.bf16.msra.mxu0 %v1326_v19  ;;  %v954_v33 = vpop.permute.xlu1 %953 }
 0x9dd   :  { %1331 = vmatprep.subr.bf16.mxu0 %v1330_v29  ;;  %v968_v37 = vsel %vm215_vm5, %v966_v35, %v954_v33 }
 0x9e0   :  { %1333 = vmatpush3.bf16.msra.mxu0 %v1330_v29 }
 0xaae   :  { %v1266_v31 = vpop.f32.mrb[6].mxu0 }
 0xaaf   :  { %961 = vrot.lane.b32.xlu1 %v1266_v31, %s1447_s14  ;;  %v932_v32 = vpop.f32.mrb[7].mxu0 }
 0xab0   :  { %959 = vrot.lane.b32.xlu0 %v932_v32, %s1447_s14 }
 0xab3   :  { %1077 = vrot.lane.b32.xlu1 %v1603_v46, %s1446_s13  ;;  %v952_v46 = vpop.permute.xlu0 %951 }
 0xab4   :  { %1075 = vrot.lane.b32.xlu0 %v1605_v48, %s1446_s13  ;;  %v965_v48 = vsel %vm131_vm1, %v1587_v7, %v944_v59 }
 0xab5   :  { %v967_v36 = vsel %vm215_vm5, %v965_v48, %v952_v46 }
 0xab7   :  { %1085 = vrot.lane.b32.xlu1 %v1634_v38, %s1443_s10 }
 0xab8   :  { %1083 = vrot.lane.b32.xlu0 %v1638_v11, %s1443_s10 }
 0xabb   :  { %1093 = vrot.lane.b32.xlu1 %v851_v22, %s1442_s9 }
 0xabc   :  { %1091 = vrot.lane.b32.xlu0 %v850_v27, %s1442_s9 }
 0xac0   :  { %989 = vrot.lane.b32.xlu0 %v1505_v9, %s1443_s10 }
 0xb21   :  { %v962_v34 = vpop.permute.xlu1 %961 }
 0xb22   :  { %v960_v13 = vpop.permute.xlu0 %959  ;;  %v971_v11 = vsel %vm969_vm10, %v968_v37, %v962_v34 }
 0xb23   :  { %v970_v38 = vsel %vm969_vm10, %v967_v36, %v960_v13 }
 0xb24   :  { %1275 = vmatprep.mubr.msk.f32.mxu0 %vm27_vm0, %v970_v38 }
 0xb25   :  { %v1078_v9 = vpop.permute.xlu1 %1077  ;;  %1276 = vmatmul.mubr.msk.f32.vlgmr.msra.gmra.mrb[8].mxu0 %vm27_vm0, %v971_v11 }
 0xb26   :  { %v1076_v39 = vpop.permute.xlu0 %1075  ;;  %v1098_v7 = vsel %vm215_vm5, %v1569_v58, %v1078_v9 }
 0xb27   :  { %v1097_v6 = vsel %vm215_vm5, %v1573_v60, %v1076_v39 }
 0xb29   :  { %v1086_v40 = vpop.permute.xlu1 %1085 }
 0xb2a   :  { %v1084_v41 = vpop.permute.xlu0 %1083  ;;  %v1100_v42 = vsel %vm27_vm0, %v1098_v7, %v1086_v40 }
 0xb2b   :  { %v1099_v44 = vsel %vm27_vm0, %v1097_v6, %v1084_v41 }
 0xb2d   :  { %v1094_v43 = vpop.permute.xlu1 %1093 }
 0xb2e   :  { %v1092_v49 = vpop.permute.xlu0 %1091  ;;  %v1103_v50 = vsel %vm1101_vm11, %v1100_v42, %v1094_v43 }
 0xb2f   :  { %1108 = vrot.lane.b32.xlu0 %v1103_v50, %s1443_s10  ;;  %v1102_v51 = vsel %vm1101_vm11, %v1099_v44, %v1092_v49 }
 0xb30   :  { %1106 = vrot.lane.b32.xlu1 %v1102_v51, %s1443_s10 }
 0xb32   :  { %v990_v52 = vpop.permute.xlu0 %989 }
 0xba1   :  { %v1109_v61 = vpop.permute.xlu0 %1108 }
 0xba2   :  { %v1107_v60 = vpop.permute.xlu1 %1106 }
 0xbf8   :  { %v1277_v55 = vpop.f32.mrb[8].mxu0 }
 0xbf9   :  { %v1070_v56 = vadd.f32 %v1277_v55, %v990_v52  ;;  %v1064_v58 = vpop.f32.mrb[9].mxu0 }
 0xbfa   :  { %v1065_v18 = vadd.f32 %v1064_v58, %v990_v52 }
 0xbfb   :  { %v1113_v62 = vsel %vm27_vm0, %v1070_v56, %v1109_v61 }
 0xbfc   :  { %v1116_v63 = vsel %vm1114_vm12, %v1113_v62, 0.0  ;;  %v1112_v4 = vsel %vm27_vm0, %v1065_v18, %v1107_v60 }
 0xbfd   :  { %1118 = vst [vmem:[%s1713_s3 + $0x8] sm:$0xff] %v1116_v63  ;;  %v1115_v8 = vsel %vm1114_vm12, %v1112_v4, 0.0 }
 0xbfe   :  { %1117 = vst [vmem:[%s1713_s3] sm:$0xff] %v1115_v8 }

</bundles_post_ra>
